<compile_context>
chip_gen: v6e
topology: v6e:2x2x1
jax: 0.10.0
libtpu: 0.0.40
codegen_flags: <defaults>
</compile_context>

<pallas_src>
import jax
import jax.numpy as jnp
from jax import lax
from jax.experimental import pallas as pl
from jax.experimental.pallas import tpu as pltpu


def _round_up(x, m):
    return (x + m - 1) // m * m


# --------------------------------------------------------------------------
# Kernel
# --------------------------------------------------------------------------
def metadata_embedding_kernel(idx_ref,     # [TB, 2]          int32: [year, lang+NY]
                              num_ref,     # [TB, NF]         f32
                              w1_ref,      # [K1, 2*E_pad]    bf16  blockdiag(folded_tab, w_num)
                              b_num_ref,   # [1, E_pad]       f32
                              wc_n_ref,    # [E_pad, E_pad]   bf16
                              b_comb_ref,  # [1, E_pad]       f32
                              out_ref):    # [TB, E_pad]      out_dtype
    TB = out_ref.shape[0]
    E_pad = out_ref.shape[1]
    NF = num_ref.shape[1]
    NYL_pad = w1_ref.shape[0] - NF

    idx = idx_ref[...]                       # [TB, 2]
    year_idx = idx[:, 0:1]                   # [TB, 1]
    lang_idx = idx[:, 1:2]                   # [TB, 1] (already offset by NY)

    # Combined one-hot over the stacked (year ; lang) folded table: the two
    # match positions are disjoint, so one OR'd one-hot replaces both lookups
    # plus their fc_combined partial matmuls (exact by associativity).
    iota = lax.broadcasted_iota(jnp.int32, (TB, NYL_pad), 1)
    onehot = jnp.logical_or(iota == year_idx, iota == lang_idx).astype(jnp.float32)

    # Fused stage-1: [onehot | num] @ blockdiag(folded_tab, w_num) -> [TB, 2*E_pad]
    # (one full-width MXU stream instead of two K-thin half-width ones).
    lhs = jnp.concatenate([onehot, num_ref[...]], axis=1).astype(w1_ref.dtype)
    stage1 = jnp.dot(lhs, w1_ref[...], preferred_element_type=jnp.float32)

    emb_yl = stage1[:, :E_pad]                                        # year+lang @ wc_{y,l}
    num_emb = jnp.maximum(stage1[:, E_pad:] + b_num_ref[...], 0.0)    # relu(fc_numerical)

    comb = (emb_yl
            + jnp.dot(num_emb.astype(wc_n_ref.dtype), wc_n_ref[...],
                      preferred_element_type=jnp.float32)
            + b_comb_ref[...])
    out_ref[...] = jnp.maximum(comb, 0.0).astype(out_ref.dtype)


# --------------------------------------------------------------------------
# One-time parameter preparation (hoisted out of the forward pass)
# --------------------------------------------------------------------------
def prepare_params(params, *, weight_dtype=jnp.bfloat16):
    """Folds wc_y/wc_l into the embedding tables, builds the block-diagonal
    stage-1 weight, pads E to a multiple of 128, and casts weights to bf16.
    Call once (e.g. at init); the result is reused by every forward call."""
    E = params["wc_n"].shape[0]
    NY = params["year_tab"].shape[0]
    NL = params["lang_tab"].shape[0]
    NF = params["w_num"].shape[0]
    NYL = NY + NL
    E_pad = _round_up(E, 128)        # lane-dense activations / unmasked stores
    NYL_pad = _round_up(NYL, 8)      # sublane-aligned one-hot width
    K1 = NYL_pad + NF

    # Fold fc_combined's year/lang blocks into the tables (exact, in f32).
    tab = jnp.concatenate([params["year_tab"] @ params["wc_y"],
                           params["lang_tab"] @ params["wc_l"]], axis=0)   # [NYL, E]

    # Block-diagonal stage-1 weight: top-left = folded table, bottom-right = w_num.
    w1 = jnp.zeros((K1, 2 * E_pad), jnp.float32)
    w1 = w1.at[:NYL, :E].set(tab)
    w1 = w1.at[NYL_pad:NYL_pad + NF, E_pad:E_pad + E].set(params["w_num"])

    wc_n = jnp.pad(params["wc_n"], ((0, E_pad - E), (0, E_pad - E)))
    b_num = jnp.pad(params["b_num"].reshape(1, E), ((0, 0), (0, E_pad - E)))
    b_comb = jnp.pad(params["b_comb"].reshape(1, E), ((0, 0), (0, E_pad - E)))

    return {
        "w1": w1.astype(weight_dtype),          # [K1, 2*E_pad]
        "wc_n": wc_n.astype(weight_dtype),      # [E_pad, E_pad]
        "b_num": b_num.astype(jnp.float32),     # [1, E_pad]
        "b_comb": b_comb.astype(jnp.float32),   # [1, E_pad]
        "meta": dict(E=E, E_pad=E_pad, NY=NY, NL=NL, NF=NF,
                     NYL_pad=NYL_pad, K1=K1),
    }


# --------------------------------------------------------------------------
# Forward
# --------------------------------------------------------------------------
def metadata_embedding_forward(year_index, language_index, numerical_features,
                               prep, *, block_b=1024, out_dtype=jnp.float32,
                               return_padded=False, single_buffer_weights=False,
                               vmem_limit_bytes=None):
    """Fused Pallas forward. Returns [B, E] (or [B, E_pad] if return_padded)."""
    m = prep["meta"]
    E, E_pad, NY, NL, NF, K1 = m["E"], m["E_pad"], m["NY"], m["NL"], m["NF"], m["K1"]
    B = numerical_features.shape[0]
    assert numerical_features.shape[1] == NF

    # Pack year & (offset) language into one [B, 2] int32 input. Clipping keeps
    # out-of-range indices well-defined (torch.nn.Embedding would raise instead).
    year = jnp.clip(year_index.astype(jnp.int32), 0, NY - 1).reshape(B, 1)
    lang = jnp.clip(language_index.astype(jnp.int32), 0, NL - 1).reshape(B, 1) + NY
    idx = jnp.concatenate([year, lang], axis=1)
    num = numerical_features.astype(jnp.float32)

    # Batch tiling: no padding, ragged last block handled by Pallas. Force
    # >=2 grid steps when B allows so "parallel" splits over v7x's 2 TCs.
    TB = int(min(block_b, max(8, _round_up(pl.cdiv(B, 2), 8))))
    grid = (pl.cdiv(B, TB),)

    def _resident(shape):
        # Constant-index_map weights stay VMEM-resident; optionally single-buffer
        # them for large E on v7x (64 MiB VMEM).
        if single_buffer_weights and hasattr(pl, "Buffered"):
            return pl.BlockSpec(shape, lambda i: (0, 0), pipeline_mode=pl.Buffered(1))
        return pl.BlockSpec(shape, lambda i: (0, 0))

    w_isize = jnp.dtype(prep["w1"].dtype).itemsize
    out_isize = jnp.dtype(out_dtype).itemsize
    flops = 2 * B * (K1 * 2 * E_pad + E_pad * E_pad)
    bytes_accessed = (B * (2 * 4 + NF * 4 + E_pad * out_isize)
                      + (K1 * 2 * E_pad + E_pad * E_pad) * w_isize
                      + 2 * E_pad * 4)

    cp_kwargs = dict(dimension_semantics=("parallel",))
    if vmem_limit_bytes is not None:
        cp_kwargs["vmem_limit_bytes"] = vmem_limit_bytes

    out = pl.pallas_call(
        metadata_embedding_kernel,
        out_shape=jax.ShapeDtypeStruct((B, E_pad), out_dtype),
        grid=grid,
        in_specs=[
            pl.BlockSpec((TB, 2), lambda i: (i, 0)),       # packed indices
            pl.BlockSpec((TB, NF), lambda i: (i, 0)),      # numerical features
            _resident((K1, 2 * E_pad)),                    # blockdiag stage-1 weight (bf16)
            _resident((1, E_pad)),                         # b_num
            _resident((E_pad, E_pad)),                     # wc_n (bf16)
            _resident((1, E_pad)),                         # b_comb
        ],
        out_specs=pl.BlockSpec((TB, E_pad), lambda i: (i, 0)),
        compiler_params=pltpu.CompilerParams(**cp_kwargs),
        cost_estimate=pl.CostEstimate(flops=flops, transcendentals=0,
                                      bytes_accessed=bytes_accessed),
    )(idx, num, prep["w1"], prep["b_num"], prep["wc_n"], prep["b_comb"])

    if return_padded or E == E_pad:
        return out
    return out[:, :E]


# --------------------------------------------------------------------------
# Parameters / reference
# --------------------------------------------------------------------------
def init_params(key, num_years, num_languages, num_numerical, emb_size):
    """fc_combined weight (torch: [E, 3E]) stored transposed & split into three
    [E, E] blocks (wc_y, wc_l, wc_n) matching the torch.cat order."""
    ks = jax.random.split(key, 6)
    E = emb_size
    return {
        "year_tab": jax.random.normal(ks[0], (num_years, E), jnp.float32),
        "lang_tab": jax.random.normal(ks[1], (num_languages, E), jnp.float32),
        "w_num":    jax.random.normal(ks[2], (num_numerical, E), jnp.float32) * 0.1,
        "b_num":    jnp.zeros((E,), jnp.float32),
        "wc_y":     jax.random.normal(ks[3], (E, E), jnp.float32) * 0.1,
        "wc_l":     jax.random.normal(ks[4], (E, E), jnp.float32) * 0.1,
        "wc_n":     jax.random.normal(ks[5], (E, E), jnp.float32) * 0.1,
        "b_comb":   jnp.full((E,), 0.01, jnp.float32),
    }


def reference_forward(year_index, language_index, numerical_features, p):
    """Pure-JAX (f32) reference mirroring the PyTorch forward exactly."""
    year_emb = p["year_tab"][year_index]
    lang_emb = p["lang_tab"][language_index]
    num_emb = jax.nn.relu(numerical_features @ p["w_num"] + p["b_num"])
    combined = jnp.concatenate([year_emb, lang_emb, num_emb], axis=1)
    wc = jnp.concatenate([p["wc_y"], p["wc_l"], p["wc_n"]], axis=0)   # [3E, E]
    return jax.nn.relu(combined @ wc + p["b_comb"])


if __name__ == "__main__":
    B = 8
    NUM_YEARS = 16
    NUM_LANGS = 8
    NUM_NUMERICAL = 4
    EMB = 32

    key = jax.random.PRNGKey(0)
    k_year, k_lang, k_num, k_params = jax.random.split(key, 4)

    year_index = jax.random.randint(k_year, (B,), 0, NUM_YEARS)
    language_index = jax.random.randint(k_lang, (B,), 0, NUM_LANGS)
    numerical_features = jax.random.normal(k_num, (B, NUM_NUMERICAL), jnp.float32)

    params = init_params(k_params, NUM_YEARS, NUM_LANGS, NUM_NUMERICAL, EMB)

    # One-time weight prep (fold + pad + bf16), hoisted out of the forward.
    prep = prepare_params(params)

    @jax.jit
    def fwd(yi, li, nf):
        return metadata_embedding_forward(yi, li, nf, prep)

    out = jax.block_until_ready(fwd(year_index, language_index, numerical_features))

    ref = reference_forward(year_index, language_index, numerical_features, params)
    assert out.shape == (B, EMB), out.shape
    # bf16 weights / activations in the matmuls (f32 accumulation) -> looser tol.
    assert jnp.allclose(out, ref, atol=3e-2, rtol=3e-2), "mismatch vs reference"

    print("KERNEL_OK")
</pallas_src>

<mosaic_0001>
module attributes {stable_mosaic.version = 11 : i64} {
  func.func @metadata_embedding_kernel(%arg0: i32, %arg1: memref<8x2xi32, #tpu.memory_space<vmem>>, %arg2: memref<8x4xf32, #tpu.memory_space<vmem>>, %arg3: memref<28x256xbf16, #tpu.memory_space<vmem>>, %arg4: memref<1x128xf32, #tpu.memory_space<vmem>>, %arg5: memref<128x128xbf16, #tpu.memory_space<vmem>>, %arg6: memref<1x128xf32, #tpu.memory_space<vmem>>, %arg7: memref<8x128xf32, #tpu.memory_space<vmem>>) attributes {dimension_semantics = [#tpu.dimension_semantics<parallel>], iteration_bounds = array<i64: 1>, scalar_prefetch = 0 : i64, scratch_operands = 0 : i64, tpu.core_type = #tpu.core_type<tc>, window_params = [{transform_indices = @transform_0, window_bounds = array<i64: 8, 2>}, {transform_indices = @transform_1, window_bounds = array<i64: 8, 4>}, {pipeline_mode = #tpu.pipeline_mode<synchronous>, transform_indices = @transform_2, window_bounds = array<i64: 28, 256>}, {pipeline_mode = #tpu.pipeline_mode<synchronous>, transform_indices = @transform_3, window_bounds = array<i64: 1, 128>}, {pipeline_mode = #tpu.pipeline_mode<synchronous>, transform_indices = @transform_4, window_bounds = array<i64: 128, 128>}, {pipeline_mode = #tpu.pipeline_mode<synchronous>, transform_indices = @transform_5, window_bounds = array<i64: 1, 128>}, {transform_indices = @transform_6, window_bounds = array<i64: 8, 128>}]} {
    %c0 = arith.constant 0 : index
    %c0_0 = arith.constant 0 : index
    %0 = vector.load %arg1[%c0, %c0_0] : memref<8x2xi32, #tpu.memory_space<vmem>>, vector<8x2xi32>
    %1 = vector.extract_strided_slice %0 {offsets = [0, 0], sizes = [8, 1], strides = [1, 1]} : vector<8x2xi32> to vector<8x1xi32>
    %2 = vector.extract_strided_slice %0 {offsets = [0, 1], sizes = [8, 1], strides = [1, 1]} : vector<8x2xi32> to vector<8x1xi32>
    %3 = tpu.iota {dimensions = array<i32: 1>} : vector<8x24xi32>
    %4 = vector.broadcast %1 : vector<8x1xi32> to vector<8x24xi32>
    %5 = arith.cmpi eq, %3, %4 : vector<8x24xi32>
    %6 = vector.broadcast %2 : vector<8x1xi32> to vector<8x24xi32>
    %7 = arith.cmpi eq, %3, %6 : vector<8x24xi32>
    %8 = arith.ori %5, %7 : vector<8x24xi1>
    %9 = arith.extui %8 : vector<8x24xi1> to vector<8x24xi32>
    %10 = arith.sitofp %9 : vector<8x24xi32> to vector<8x24xf32>
    %c0_1 = arith.constant 0 : index
    %c0_2 = arith.constant 0 : index
    %11 = vector.load %arg2[%c0_1, %c0_2] : memref<8x4xf32, #tpu.memory_space<vmem>>, vector<8x4xf32>
    %12 = tpu.concatenate %10, %11 in 1 : vector<8x24xf32>, vector<8x4xf32> -> vector<8x28xf32>
    %13 = arith.truncf %12 : vector<8x28xf32> to vector<8x28xbf16>
    %c0_3 = arith.constant 0 : index
    %c0_4 = arith.constant 0 : index
    %14 = vector.load %arg3[%c0_3, %c0_4] : memref<28x256xbf16, #tpu.memory_space<vmem>>, vector<28x256xbf16>
    %cst = arith.constant dense<0.000000e+00> : vector<8x256xf32>
    %15 = tpu.matmul %13, %14, %cst {dimension_numbers = #tpu.dot_dimension_numbers<[1], [0], [0], [1], [0, 0, 1, 1], [], []>} : vector<8x28xbf16>, vector<28x256xbf16>, vector<8x256xf32> -> vector<8x256xf32>
    %16 = vector.extract_strided_slice %15 {offsets = [0, 0], sizes = [8, 128], strides = [1, 1]} : vector<8x256xf32> to vector<8x128xf32>
    %17 = vector.extract_strided_slice %15 {offsets = [0, 128], sizes = [8, 128], strides = [1, 1]} : vector<8x256xf32> to vector<8x128xf32>
    %c0_5 = arith.constant 0 : index
    %c0_6 = arith.constant 0 : index
    %18 = vector.load %arg4[%c0_5, %c0_6] : memref<1x128xf32, #tpu.memory_space<vmem>>, vector<1x128xf32>
    %19 = vector.broadcast %18 : vector<1x128xf32> to vector<8x128xf32>
    %20 = arith.addf %17, %19 : vector<8x128xf32>
    %cst_7 = arith.constant 0.000000e+00 : f32
    %21 = vector.broadcast %cst_7 : f32 to vector<8x128xf32>
    %22 = arith.maximumf %20, %21 : vector<8x128xf32>
    %23 = arith.truncf %22 : vector<8x128xf32> to vector<8x128xbf16>
    %c0_8 = arith.constant 0 : index
    %c0_9 = arith.constant 0 : index
    %24 = vector.load %arg5[%c0_8, %c0_9] : memref<128x128xbf16, #tpu.memory_space<vmem>>, vector<128x128xbf16>
    %cst_10 = arith.constant dense<0.000000e+00> : vector<8x128xf32>
    %25 = tpu.matmul %23, %24, %cst_10 {dimension_numbers = #tpu.dot_dimension_numbers<[1], [0], [0], [1], [0, 0, 1, 1], [], []>} : vector<8x128xbf16>, vector<128x128xbf16>, vector<8x128xf32> -> vector<8x128xf32>
    %26 = arith.addf %16, %25 : vector<8x128xf32>
    %c0_11 = arith.constant 0 : index
    %c0_12 = arith.constant 0 : index
    %27 = vector.load %arg6[%c0_11, %c0_12] : memref<1x128xf32, #tpu.memory_space<vmem>>, vector<1x128xf32>
    %28 = vector.broadcast %27 : vector<1x128xf32> to vector<8x128xf32>
    %29 = arith.addf %26, %28 : vector<8x128xf32>
    %cst_13 = arith.constant 0.000000e+00 : f32
    %30 = vector.broadcast %cst_13 : f32 to vector<8x128xf32>
    %31 = arith.maximumf %29, %30 : vector<8x128xf32>
    %c0_14 = arith.constant 0 : index
    %c0_15 = arith.constant 0 : index
    %32 = vector.load %arg7[%c0_14, %c0_15] : memref<8x128xf32, #tpu.memory_space<vmem>>, vector<8x128xf32>
    tpu.vector_store %arg7[%c0_14, %c0_15], %31 {strides = array<i32>} : memref<8x128xf32, #tpu.memory_space<vmem>>, vector<8x128xf32>,
    return
  }
  func.func @transform_0(%arg0: i32) -> (i32, i32) {
    %c0_i32 = arith.constant 0 : i32
    %c0_i32_0 = arith.constant 0 : i32
    return %arg0, %c0_i32 : i32, i32
  }
  func.func @transform_1(%arg0: i32) -> (i32, i32) {
    %c0_i32 = arith.constant 0 : i32
    %c0_i32_0 = arith.constant 0 : i32
    return %arg0, %c0_i32 : i32, i32
  }
  func.func @transform_2(%arg0: i32) -> (i32, i32) {
    %c0_i32 = arith.constant 0 : i32
    %c0_i32_0 = arith.constant 0 : i32
    %c0_i32_1 = arith.constant 0 : i32
    return %c0_i32, %c0_i32_0 : i32, i32
  }
  func.func @transform_3(%arg0: i32) -> (i32, i32) {
    %c0_i32 = arith.constant 0 : i32
    %c0_i32_0 = arith.constant 0 : i32
    %c0_i32_1 = arith.constant 0 : i32
    return %c0_i32, %c0_i32_0 : i32, i32
  }
  func.func @transform_4(%arg0: i32) -> (i32, i32) {
    %c0_i32 = arith.constant 0 : i32
    %c0_i32_0 = arith.constant 0 : i32
    %c0_i32_1 = arith.constant 0 : i32
    return %c0_i32, %c0_i32_0 : i32, i32
  }
  func.func @transform_5(%arg0: i32) -> (i32, i32) {
    %c0_i32 = arith.constant 0 : i32
    %c0_i32_0 = arith.constant 0 : i32
    %c0_i32_1 = arith.constant 0 : i32
    return %c0_i32, %c0_i32_0 : i32, i32
  }
  func.func @transform_6(%arg0: i32) -> (i32, i32) {
    %c0_i32 = arith.constant 0 : i32
    %c0_i32_0 = arith.constant 0 : i32
    return %arg0, %c0_i32 : i32, i32
  }
}

</mosaic_0001>

<bundles_post_ra>
// kernel: fwd.1
= control target key start
LH: loop header
LB: loop body
LE: loop exit
PB: predicated region body
PF: predicated region fallthrough
CT: control target
= control target key end

     0   :  { %11 = vsyncpa [#allocation3], 0  ;;  %s464_s0 = inlined_call_operand.vmem [shape: s32[8,2], index: 0, kind: input, shape index: {}]   ;;  %s465_s1 = inlined_call_operand.vmem [shape: f32[8,4], index: 1, kind: input, shape index: {}]   ;;  %s466_s2 = inlined_call_operand.vmem [shape: bf16[28,256], index: 2, kind: input, shape index: {}]   ;;  %s467_s3 = inlined_call_operand.vmem [shape: f32[1,128], index: 3, kind: input, shape index: {}]   ;;  %s468_s4 = inlined_call_operand.hbm [shape: bf16[128,128], index: 4, kind: input, shape index: {}]   ;;  %s469_s5 = inlined_call_operand.vmem [shape: f32[1,128], index: 5, kind: input, shape index: {}]   ;;  %s470_s6 = inlined_call_operand.hbm [shape: f32[8,128], index: 6, kind: output, shape index: {}]  }
   0x1   :  { %12 = vsyncpa [#allocation4], 0  ;;  %s390_s21 = smov [#allocation2]  }
   0x2   :  { %s26_s22 = sshll.u32 %s390_s21, 4  ;;  %s27_s22 = int_to_ptr.vmem [resolvable:$true] %s26_s22 }
   0x3   :  { %s354_s23 = scalar_lea.vmem %s27_s22, 1024  ;;  %p359_p1 = scmp.lt.s32.totalorder %s27_s22, %s27_s22 }
   0x4   :  { %p355_p0 = scmp.ne.s32.totalorder %s27_s22, %s354_s23  ;;  %p360_p2 = scmp.lt.s32.totalorder %s354_s23, %s354_s23 }
   0x6   :  { %p361_p3 = por %p360_p2, %p359_p1 }
   0x8   :  { %p362_p4 = pnand %p361_p3, %p355_p0 }
   0xa   :  { %365 = shalt.err (!%p362_p4)
}
   0xb   :  { %s391_s24 = smov 64   ;;  %s392_s25 = smov 4  }
   0xc   :  { %32 = dma.hbm_to_vmem [thread:$0]  %s468_s4, 1024, %s27_s22, [#allocation3], %s391_s24, %s391_s24, %s392_s25  }
   0xd   :  { %386 = dma.done.wait [#allocation3], 1024  }
   0xe   :  { %387 = vsyncadd [#allocation3], 4294966272  ;;  %v393_v0 = vmov 0   ;;  %v394_v1 = vmov 0.0   ;;  %v39_v2 = vld [vmem:[%s464_s0] sm:$0xff]  ;;  %vm87_vm0 = vcmask 1045504   ;;  %v40_v16 = vlaneseq }
   0xf   :  { %330 = vset.pattern.permute.xlu0 %v393_v0  ;;  %126 = vmatprep.mubr.bf16.mxu0 %v393_v0  ;;  %v53_v3 = vld [vmem:[%s465_s1] sm:$0xff]  ;;  %s395_s8 = smov 24   ;;  %v332_v4 = vld [vmem:[%s466_s2 + $0x14] ss:$8 sps:$4 sm:$0x3f]   ;;  %v396_v9 = vmov 1  }
  0x10   :  { %301 = vmatprep.subr.bf16.mxu1 %v394_v1  ;;  %43 = vperm.xlu0 %330, %v39_v2   ;;  %v334_v5 = vld [vmem:[%s466_s2 + $0x10] ss:$8 sps:$4 sm:$0x3f]   ;;  %v335_v6 = vld [vmem:[%s466_s2 + $0x4] ss:$8 sps:$4 sm:$0xff]   ;;  %v41_v18 = vand.u32 127, %v40_v16 }
  0x11   :  { %55 = vrot.lane.b32.xlu1 %v53_v3, %s395_s8  ;;  %280 = vmatprep.subr.msk.bf16.mxu0 %vm87_vm0, %v332_v4  ;;  %v337_v7 = vld [vmem:[%s466_s2] ss:$8 sps:$4 sm:$0xff]   ;;  %v89_v8 = vsel %vm87_vm0, %v334_v5, 0  ;;  %v338_v10 = vld [vmem:[#allocation2 + $0x38] sm:$0xff]   ;;  %v339_v11 = vld [vmem:[#allocation2 + $0x30] sm:$0xff]   ;;  %vm58_vm3 = vcmask 195584  }
  0x12   :  { %107 = vmatpush1.bf16.msra.mxu0 %v89_v8  ;;  %302 = vmatpush3.bf16.msra.mxu1 %v338_v10  ;;  %v340_v12 = vld [vmem:[#allocation2 + $0x28] sm:$0xff]   ;;  %v341_v13 = vld [vmem:[#allocation2 + $0x20] sm:$0xff]   ;;  %v342_v14 = vld [vmem:[#allocation2 + $0x18] sm:$0xff]   ;;  %vm83_vm5 = vcmask 228352   ;;  %vm397_vm6 = vmmov 0   ;;  %s398_s17 = smov [#allocation5]  }
  0x13   :  { %108 = vmatprep.subr.bf16.mxu0 %v335_v6  ;;  %303 = vmatprep.subr.bf16.mxu1 %v394_v1  ;;  %v343_v15 = vld [vmem:[#allocation2 + $0x10] sm:$0xff]   ;;  %v344_v24 = vld [vmem:[#allocation2 + $0x8] sm:$0xff]   ;;  %v345_v25 = vld [vmem:[#allocation2] sm:$0xff]   ;;  %s266_s18 = sshll.u32 %s398_s17, 4  ;;  %s267_s18 = int_to_ptr.vmem [resolvable:$true] %s266_s18 }
  0x14   :  { %331 = vset.pattern.permute.xlu0 %v396_v9  ;;  %317 = vmatprep.mubr.msk.bf16.mxu1 %vm397_vm6, %v394_v1  ;;  %v282_v27 = vld [vmem:[%s467_s3] ss:$0 sm:$0xff]  ;;  %s366_s3 = scalar_lea.vmem %s267_s18, 128  ;;  %p371_p6 = scmp.lt.s32.totalorder %s267_s18, %s267_s18 }
  0x15   :  { %47 = vperm.xlu0 %331, %v39_v2   ;;  %v291_v35 = vld [vmem:[%s469_s5] ss:$0 sm:$0xff]  ;;  %p367_p5 = scmp.ne.s32.totalorder %s267_s18, %s366_s3  ;;  %p372_p7 = scmp.lt.s32.totalorder %s366_s3, %s366_s3 }
  0x16   :  { %109 = vmatpush1.bf16.msra.mxu0 %v337_v7  ;;  %304 = vmatpush3.bf16.msra.mxu1 %v339_v11 }
  0x17   :  { %305 = vmatprep.subr.bf16.mxu1 %v394_v1  ;;  %p373_p8 = por %p372_p7, %p371_p6 }
  0x19   :  { %p374_p9 = pnand %p373_p8, %p367_p5 }
  0x1a   :  { %306 = vmatpush3.bf16.msra.mxu1 %v340_v12 }
  0x1b   :  { %307 = vmatprep.subr.bf16.mxu1 %v394_v1 }
  0x1e   :  { %308 = vmatpush3.bf16.msra.mxu1 %v341_v13 }
  0x1f   :  { %309 = vmatprep.subr.bf16.mxu1 %v394_v1 }
  0x22   :  { %310 = vmatpush3.bf16.msra.mxu1 %v342_v14 }
  0x23   :  { %311 = vmatprep.subr.bf16.mxu1 %v394_v1 }
  0x26   :  { %312 = vmatpush3.bf16.msra.mxu1 %v343_v15 }
  0x27   :  { %313 = vmatprep.subr.bf16.mxu1 %v394_v1 }
  0x2a   :  { %314 = vmatpush3.bf16.msra.mxu1 %v344_v24 }
  0x2b   :  { %315 = vmatprep.subr.bf16.mxu1 %v394_v1 }
  0x2e   :  { %316 = vmatpush3.bf16.msra.mxu1 %v345_v25 }
  0x83   :  { %v56_v20 = vpop.permute.xlu1 %55 }
  0x8b   :  { %v44_v17 = vpop.permute.xlu0 %43 }
  0x8c   :  { %vm45_vm1 = vcmp.eq.s32.totalorder %v41_v18, %v44_v17 }
  0x90   :  { %v48_v19 = vpop.permute.xlu0 %47 }
  0x91   :  { %vm49_vm2 = vcmp.eq.s32.totalorder %v41_v18, %v48_v19 }
  0x92   :  { %vm50_vm4 = vmor %vm45_vm1, %vm49_vm2 }
  0x93   :  { %v275_v21 = vsel %vm50_vm4, 1.0, %v394_v1 }
  0x94   :  { %v59_v22 = vsel %vm58_vm3, %v275_v21, %v56_v20 }
  0x95   :  { %v60_v23 = vpack.c.bf16 %v59_v22, %v59_v22 }
  0x97   :  { %281 = vmatmul.mubr.msk.bf16.vlgmr.msra.gmra.mxu0 %vm83_vm5, %v60_v23 }
 0x157   :  { %v128_v26 = vpop.f32.mrf.mxu0 }
 0x159   :  { %v130_v28 = vpop.f32.mrf.mxu0 }
 0x15a   :  { %v142_v29 = vadd.f32 %v282_v27, %v130_v28 }
 0x15b   :  { %v132_v30 = vpop.f32.mrf.mxu0 }
 0x15c   :  { %v143_v31 = vmax.f32 %v142_v29, 0.0 }
 0x15d   :  { %v133_v32 = vpop.f32.mrf.mxu0 }
 0x15e   :  { %v144_v33 = vpack.c.bf16 %v143_v31, %v143_v31 }
 0x160   :  { %318 = vmatmul.mubr.bf16.vlgmr.msra.gmra.mxu1 %v144_v33 }
 0x220   :  { %v243_v34 = vpop.f32.mrf.mxu1 }
 0x221   :  { %v249_v36 = vadd.f32 %v243_v34, %v128_v26 }
 0x222   :  { %v319_v37 = vpop.f32.mrf.mxu1 }
 0x223   :  { %v257_v38 = vadd.f32 %v291_v35, %v249_v36 }
 0x224   :  { %v246_v39 = vpop.f32.mrf.mxu1 }
 0x225   :  { %v258_v40 = vmax.f32 %v257_v38, 0.0 }
 0x226   :  { %v320_v41 = vpop.f32.mrf.mxu1 }
 0x227   :  { %259 = vst [vmem:[#allocation5] sm:$0xff] %v258_v40 }
 0x228   :  { %377 = shalt.err (!%p374_p9)
}
 0x229   :  { %269 = dma.vmem_to_hbm [thread:$0]  %s267_s18, 128, %s470_s6, [#allocation4]  }
 0x22a   :  { %388 = dma.done.wait [#allocation4], 128  }
 0x22b   :  { %389 = vsyncadd [#allocation4], 4294967168 }
 0x22c   :  { %273 = vsyncpa [#allocation3], 1 }
 0x22d   :  { %274 = vsyncpa [#allocation4], 1 }

</bundles_post_ra>
